<compile_context>
chip_gen: v7x
topology: tpu7x:2x2x1
jax: 0.10.0
libtpu: 0.0.40
codegen_flags: <defaults>
</compile_context>

<pallas_src>
import functools

import jax
import jax.numpy as jnp
from jax import lax
from jax.experimental import pallas as pl
from jax.experimental.pallas import tpu as pltpu


def _gal_conv2d_kernel(x_ref, w_ref, b_ref, o_ref, *, bt, ic, oc, ks, Wp, n_lanes):
    """Stride-1 conv via per-tap MXU matmuls over a flattened (lane-dense) plane.

    x_ref: VMEM (bt, C, Hp*Wp)       flattened input planes, C >= ic (extra channels,
                                     e.g. the depth channel, are ignored)
    w_ref: VMEM (ks*ks, oc, ic) f32  conv weights, tap-major (tap = kh*ks + kw)
    b_ref: VMEM (oc, 1) f32          bias
    o_ref: VMEM (bt, oc, n_lanes)    flattened output; positions p with p % Wp >= ow
                                     are garbage and discarded by the wrapper
    """
    # Batch-invariant operands, hoisted out of the image loop.
    taps = [w_ref[t] for t in range(ks * ks)]        # list of (oc, ic) tiles
    bias = b_ref[...]                                # (oc, 1)

    def compute(bb):
        # Cast the whole plane once per image (not once per tap).
        xb = x_ref[bb].astype(jnp.float32)           # (C, Hp*Wp)
        # Initialize the accumulator from the bias (saves a final add).
        acc = jnp.broadcast_to(bias, (oc, n_lanes))
        for kh in range(ks):
            for kw in range(ks):
                off = kh * Wp + kw                   # static flat offset of this tap
                xs = xb[:ic, off:off + n_lanes]      # (ic, n_lanes) contiguous slice
                acc = acc + jnp.dot(taps[kh * ks + kw], xs,
                                    preferred_element_type=jnp.float32)
        o_ref[bb] = acc.astype(o_ref.dtype)

    if bt <= 4:
        # Small batch blocks: static unroll (static indices, smallest overhead).
        for bb in range(bt):
            compute(bb)
    else:
        # Large batch blocks: rolled loop keeps code size / vreg pressure flat.
        def body(bb, carry):
            compute(bb)
            return carry
        lax.fori_loop(0, bt, body, 0)


def _pick_batch_block(B, per_image_vmem_bytes):
    """>=2 grid steps when B >= 2 (v7x: 2 TCs), as large as a ~8 MiB/step budget allows."""
    budget = 8 << 20
    bb_max = max(1, budget // max(per_image_vmem_bytes, 1))
    bb = max(1, min(B // 2 if B >= 2 else 1, bb_max))
    while B % bb:
        bb -= 1
    return bb


def gal_conv2d(x, coeffs, dilation, shift, *, in_channels, out_channels,
               kernel_size=3, stride=1, padding=0, deg=5, batch_block=None):
    """Forward pass of GalConv2d (Fourier eigenbasis, n_eig = 2)."""
    assert stride == 1, "only stride=1 (the module default) is implemented"
    B, c_tot, H, W = x.shape
    ic, oc, ks = in_channels, out_channels, kernel_size
    assert c_tot == ic + 1, "input must carry the depth variable as its last channel"
    n = oc * ic * ks * ks
    N = n + oc
    assert coeffs.shape == (N, deg, 2)

    # ---- Galerkin weight expansion (tiny: (N, deg) basis contraction) -- plain jnp.
    # w[k] = sum_j coeffs[k,j,0]*cos(s*nr[j]) + coeffs[k,j,1]*sin(s*nr[j])
    # (== (B @ coeffs_cat).sum(0) in GalLayer.calculate_weights; nr matches
    #  torch.linspace(0, deg, deg) exactly.)
    t = x[-1, -1, 0, 0]                                   # torch: input[-1, -1, 0, 0]
    s = (t * dilation[0] + shift[0]).astype(jnp.float32)
    nr = jnp.linspace(0.0, float(deg), deg, dtype=jnp.float32)
    w = (coeffs[:, :, 0].astype(jnp.float32) @ jnp.cos(s * nr)
         + coeffs[:, :, 1].astype(jnp.float32) @ jnp.sin(s * nr))         # (N,)
    w_conv = w[:n].reshape(oc, ic, ks, ks)                                # OIHW
    # Tap-major (ks*ks, oc, ic): w_ref[tap] is a relayout-free (oc, ic) MXU operand.
    w_taps = jnp.transpose(w_conv, (2, 3, 0, 1)).reshape(ks * ks, oc, ic)
    bias = w[n:].reshape(oc, 1)

    # ---- input handling ----------------------------------------------------------
    if padding > 0:
        # TODO(synk): fold zero-padding into the kernel (zero-init VMEM scratch)
        # instead of materializing a padded HBM copy.
        Hp, Wp = H + 2 * padding, W + 2 * padding
        xp = jnp.pad(x[:, :ic], ((0, 0), (0, 0),
                                 (padding, padding), (padding, padding)))
        x_flat = xp.reshape(B, ic, Hp * Wp)
    else:
        Hp, Wp = H, W
        # Free (contiguous) reshape; the depth channel is dropped inside the kernel.
        x_flat = x.reshape(B, c_tot, Hp * Wp)
    C = x_flat.shape[1]
    oh, ow = Hp - ks + 1, Wp - ks + 1
    # Flattened output length: exactly covers valid positions; every tap's slice
    # [off, off + n_lanes) stays inside the Hp*Wp flat image (no tail padding needed).
    n_lanes = (oh - 1) * Wp + ow

    if batch_block is None:
        per_image = 2 * (C * Hp * Wp + oc * n_lanes) * x.dtype.itemsize  # dbl-buffered
        batch_block = _pick_batch_block(B, per_image)
    assert B % batch_block == 0

    kern = functools.partial(_gal_conv2d_kernel, bt=batch_block, ic=ic, oc=oc,
                             ks=ks, Wp=Wp, n_lanes=n_lanes)
    out_flat = pl.pallas_call(
        kern,
        out_shape=jax.ShapeDtypeStruct((B, oc, n_lanes), x.dtype),
        grid=(B // batch_block,),
        in_specs=[
            pl.BlockSpec((batch_block, C, Hp * Wp), lambda b: (b, 0, 0)),
            pl.BlockSpec((ks * ks, oc, ic), lambda b: (0, 0, 0)),
            pl.BlockSpec((oc, 1), lambda b: (0, 0)),
        ],
        out_specs=pl.BlockSpec((batch_block, oc, n_lanes), lambda b: (b, 0, 0)),
        compiler_params=pltpu.CompilerParams(
            dimension_semantics=("parallel",)),
    )(x_flat, w_taps, bias)

    # Layout plumbing (wrapper side, cheap): drop the wrap-around columns and return
    # NCHW (B, oc, oh, ow).
    out = jnp.pad(out_flat, ((0, 0), (0, 0), (0, oh * Wp - n_lanes)))
    out = out.reshape(B, oc, oh, Wp)[:, :, :, :ow]
    return out


def _reference(x, coeffs, dilation, shift, ic, oc, ks, deg, padding=0):
    """Pure-JAX mirror of the PyTorch forward (for verification)."""
    t = x[-1, -1, 0, 0]
    x_in = x[:, :-1]
    s = t * dilation[0] + shift[0]
    nr = jnp.linspace(0.0, float(deg), deg, dtype=jnp.float32)
    w = coeffs[:, :, 0] @ jnp.cos(s * nr) + coeffs[:, :, 1] @ jnp.sin(s * nr)
    n = oc * ic * ks * ks
    weight = w[:n].reshape(oc, ic, ks, ks)
    bias = w[n:]
    out = lax.conv_general_dilated(
        x_in, weight, window_strides=(1, 1),
        padding=[(padding, padding), (padding, padding)],
        dimension_numbers=("NCHW", "OIHW", "NCHW"))
    return out + bias[None, :, None, None]


if __name__ == "__main__":
    key = jax.random.PRNGKey(0)
    k_x, k_c = jax.random.split(key)

    # Small shapes consistent with the module: GalConv2d(in_channels=4,
    # out_channels=4, kernel_size=3). Input carries ic + 1 channels (time).
    B, ic, oc, ks, deg = 2, 4, 4, 3, 5
    H = W = 16
    N = oc * ic * ks * ks + oc                    # 148

    x = jax.random.normal(k_x, (B, ic + 1, H, W), dtype=jnp.float32)
    # Module __init__ zeros the coeffs (output would be all-zero); use small
    # deterministic random coeffs so the kernel is actually exercised.
    coeffs = 0.1 * jax.random.normal(k_c, (N, deg, 2), dtype=jnp.float32)
    dilation = jnp.ones((1,), jnp.float32)        # GalLayer default init
    shift = jnp.zeros((1,), jnp.float32)

    # 1) main check: padding=0, auto batch_block (2 parallel grid steps).
    out = gal_conv2d(x, coeffs, dilation, shift, in_channels=ic, out_channels=oc,
                     kernel_size=ks, stride=1, padding=0, deg=deg)
    out = jax.block_until_ready(out)
    ref = _reference(x, coeffs, dilation, shift, ic, oc, ks, deg, padding=0)
    assert out.shape == ref.shape == (B, oc, H - ks + 1, W - ks + 1)
    err = float(jnp.max(jnp.abs(out - ref)))
    assert jnp.allclose(out, ref, atol=1e-4, rtol=1e-4), err

    # 2) padding=1 path (wrapper-side zero pad).
    out_p = gal_conv2d(x, coeffs, dilation, shift, in_channels=ic, out_channels=oc,
                       kernel_size=ks, stride=1, padding=1, deg=deg)
    out_p = jax.block_until_ready(out_p)
    ref_p = _reference(x, coeffs, dilation, shift, ic, oc, ks, deg, padding=1)
    assert out_p.shape == ref_p.shape == (B, oc, H, W)
    err_p = float(jnp.max(jnp.abs(out_p - ref_p)))
    assert jnp.allclose(out_p, ref_p, atol=1e-4, rtol=1e-4), err_p

    # 3) larger batch_block (> 4) exercises the lax.fori_loop batch path.
    B2 = 8
    x2 = jax.random.normal(jax.random.PRNGKey(1), (B2, ic + 1, H, W),
                           dtype=jnp.float32)
    out2 = gal_conv2d(x2, coeffs, dilation, shift, in_channels=ic, out_channels=oc,
                      kernel_size=ks, stride=1, padding=0, deg=deg, batch_block=8)
    out2 = jax.block_until_ready(out2)
    ref2 = _reference(x2, coeffs, dilation, shift, ic, oc, ks, deg, padding=0)
    err2 = float(jnp.max(jnp.abs(out2 - ref2)))
    assert jnp.allclose(out2, ref2, atol=1e-4, rtol=1e-4), err2

    print("KERNEL_OK")
</pallas_src>

<mosaic_0001>
module attributes {stable_mosaic.version = 11 : i64} {
  func.func @_gal_conv2d_kernel(%arg0: i32, %arg1: memref<1x5x256xf32, #tpu.memory_space<vmem>>, %arg2: memref<9x4x4xf32, #tpu.memory_space<vmem>>, %arg3: memref<4x1xf32, #tpu.memory_space<vmem>>, %arg4: memref<1x4x222xf32, #tpu.memory_space<vmem>>) attributes {dimension_semantics = [#tpu.dimension_semantics<parallel>], iteration_bounds = array<i64: 2>, scalar_prefetch = 0 : i64, scratch_operands = 0 : i64, tpu.core_type = #tpu.core_type<tc>, window_params = [{transform_indices = @transform_0, window_bounds = array<i64: 1, 5, 256>}, {pipeline_mode = #tpu.pipeline_mode<synchronous>, transform_indices = @transform_1, window_bounds = array<i64: 9, 4, 4>}, {pipeline_mode = #tpu.pipeline_mode<synchronous>, transform_indices = @transform_2, window_bounds = array<i64: 4, 1>}, {transform_indices = @transform_3, window_bounds = array<i64: 1, 4, 222>}]} {
    %c0 = arith.constant 0 : index
    %c0_0 = arith.constant 0 : index
    %c0_1 = arith.constant 0 : index
    %0 = vector.load %arg2[%c0, %c0_0, %c0_1] : memref<9x4x4xf32, #tpu.memory_space<vmem>>, vector<1x4x4xf32>
    %1 = vector.shape_cast %0 : vector<1x4x4xf32> to vector<4x4xf32>
    %c1 = arith.constant 1 : index
    %c0_2 = arith.constant 0 : index
    %c0_3 = arith.constant 0 : index
    %2 = vector.load %arg2[%c1, %c0_2, %c0_3] : memref<9x4x4xf32, #tpu.memory_space<vmem>>, vector<1x4x4xf32>
    %3 = vector.shape_cast %2 : vector<1x4x4xf32> to vector<4x4xf32>
    %c2 = arith.constant 2 : index
    %c0_4 = arith.constant 0 : index
    %c0_5 = arith.constant 0 : index
    %4 = vector.load %arg2[%c2, %c0_4, %c0_5] : memref<9x4x4xf32, #tpu.memory_space<vmem>>, vector<1x4x4xf32>
    %5 = vector.shape_cast %4 : vector<1x4x4xf32> to vector<4x4xf32>
    %c3 = arith.constant 3 : index
    %c0_6 = arith.constant 0 : index
    %c0_7 = arith.constant 0 : index
    %6 = vector.load %arg2[%c3, %c0_6, %c0_7] : memref<9x4x4xf32, #tpu.memory_space<vmem>>, vector<1x4x4xf32>
    %7 = vector.shape_cast %6 : vector<1x4x4xf32> to vector<4x4xf32>
    %c4 = arith.constant 4 : index
    %c0_8 = arith.constant 0 : index
    %c0_9 = arith.constant 0 : index
    %8 = vector.load %arg2[%c4, %c0_8, %c0_9] : memref<9x4x4xf32, #tpu.memory_space<vmem>>, vector<1x4x4xf32>
    %9 = vector.shape_cast %8 : vector<1x4x4xf32> to vector<4x4xf32>
    %c5 = arith.constant 5 : index
    %c0_10 = arith.constant 0 : index
    %c0_11 = arith.constant 0 : index
    %10 = vector.load %arg2[%c5, %c0_10, %c0_11] : memref<9x4x4xf32, #tpu.memory_space<vmem>>, vector<1x4x4xf32>
    %11 = vector.shape_cast %10 : vector<1x4x4xf32> to vector<4x4xf32>
    %c6 = arith.constant 6 : index
    %c0_12 = arith.constant 0 : index
    %c0_13 = arith.constant 0 : index
    %12 = vector.load %arg2[%c6, %c0_12, %c0_13] : memref<9x4x4xf32, #tpu.memory_space<vmem>>, vector<1x4x4xf32>
    %13 = vector.shape_cast %12 : vector<1x4x4xf32> to vector<4x4xf32>
    %c7 = arith.constant 7 : index
    %c0_14 = arith.constant 0 : index
    %c0_15 = arith.constant 0 : index
    %14 = vector.load %arg2[%c7, %c0_14, %c0_15] : memref<9x4x4xf32, #tpu.memory_space<vmem>>, vector<1x4x4xf32>
    %15 = vector.shape_cast %14 : vector<1x4x4xf32> to vector<4x4xf32>
    %c8 = arith.constant 8 : index
    %c0_16 = arith.constant 0 : index
    %c0_17 = arith.constant 0 : index
    %16 = vector.load %arg2[%c8, %c0_16, %c0_17] : memref<9x4x4xf32, #tpu.memory_space<vmem>>, vector<1x4x4xf32>
    %17 = vector.shape_cast %16 : vector<1x4x4xf32> to vector<4x4xf32>
    %c0_18 = arith.constant 0 : index
    %c0_19 = arith.constant 0 : index
    %18 = vector.load %arg3[%c0_18, %c0_19] : memref<4x1xf32, #tpu.memory_space<vmem>>, vector<4x1xf32>
    %c0_20 = arith.constant 0 : index
    %c0_21 = arith.constant 0 : index
    %c0_22 = arith.constant 0 : index
    %19 = vector.load %arg1[%c0_20, %c0_21, %c0_22] : memref<1x5x256xf32, #tpu.memory_space<vmem>>, vector<1x5x256xf32>
    %20 = vector.shape_cast %19 : vector<1x5x256xf32> to vector<5x256xf32>
    %21 = vector.shape_cast %18 : vector<4x1xf32> to vector<4x1xf32>
    %22 = vector.broadcast %21 : vector<4x1xf32> to vector<4x222xf32>
    %23 = vector.extract_strided_slice %20 {offsets = [0, 0], sizes = [4, 222], strides = [1, 1]} : vector<5x256xf32> to vector<4x222xf32>
    %cst = arith.constant dense<0.000000e+00> : vector<4x222xf32>
    %24 = tpu.matmul %1, %23, %cst {dimension_numbers = #tpu.dot_dimension_numbers<[1], [0], [0], [1], [0, 0, 1, 1], [], []>} : vector<4x4xf32>, vector<4x222xf32>, vector<4x222xf32> -> vector<4x222xf32>
    %25 = arith.addf %22, %24 : vector<4x222xf32>
    %26 = vector.extract_strided_slice %20 {offsets = [0, 1], sizes = [4, 222], strides = [1, 1]} : vector<5x256xf32> to vector<4x222xf32>
    %cst_23 = arith.constant dense<0.000000e+00> : vector<4x222xf32>
    %27 = tpu.matmul %3, %26, %cst_23 {dimension_numbers = #tpu.dot_dimension_numbers<[1], [0], [0], [1], [0, 0, 1, 1], [], []>} : vector<4x4xf32>, vector<4x222xf32>, vector<4x222xf32> -> vector<4x222xf32>
    %28 = arith.addf %25, %27 : vector<4x222xf32>
    %29 = vector.extract_strided_slice %20 {offsets = [0, 2], sizes = [4, 222], strides = [1, 1]} : vector<5x256xf32> to vector<4x222xf32>
    %cst_24 = arith.constant dense<0.000000e+00> : vector<4x222xf32>
    %30 = tpu.matmul %5, %29, %cst_24 {dimension_numbers = #tpu.dot_dimension_numbers<[1], [0], [0], [1], [0, 0, 1, 1], [], []>} : vector<4x4xf32>, vector<4x222xf32>, vector<4x222xf32> -> vector<4x222xf32>
    %31 = arith.addf %28, %30 : vector<4x222xf32>
    %32 = vector.extract_strided_slice %20 {offsets = [0, 16], sizes = [4, 222], strides = [1, 1]} : vector<5x256xf32> to vector<4x222xf32>
    %cst_25 = arith.constant dense<0.000000e+00> : vector<4x222xf32>
    %33 = tpu.matmul %7, %32, %cst_25 {dimension_numbers = #tpu.dot_dimension_numbers<[1], [0], [0], [1], [0, 0, 1, 1], [], []>} : vector<4x4xf32>, vector<4x222xf32>, vector<4x222xf32> -> vector<4x222xf32>
    %34 = arith.addf %31, %33 : vector<4x222xf32>
    %35 = vector.extract_strided_slice %20 {offsets = [0, 17], sizes = [4, 222], strides = [1, 1]} : vector<5x256xf32> to vector<4x222xf32>
    %cst_26 = arith.constant dense<0.000000e+00> : vector<4x222xf32>
    %36 = tpu.matmul %9, %35, %cst_26 {dimension_numbers = #tpu.dot_dimension_numbers<[1], [0], [0], [1], [0, 0, 1, 1], [], []>} : vector<4x4xf32>, vector<4x222xf32>, vector<4x222xf32> -> vector<4x222xf32>
    %37 = arith.addf %34, %36 : vector<4x222xf32>
    %38 = vector.extract_strided_slice %20 {offsets = [0, 18], sizes = [4, 222], strides = [1, 1]} : vector<5x256xf32> to vector<4x222xf32>
    %cst_27 = arith.constant dense<0.000000e+00> : vector<4x222xf32>
    %39 = tpu.matmul %11, %38, %cst_27 {dimension_numbers = #tpu.dot_dimension_numbers<[1], [0], [0], [1], [0, 0, 1, 1], [], []>} : vector<4x4xf32>, vector<4x222xf32>, vector<4x222xf32> -> vector<4x222xf32>
    %40 = arith.addf %37, %39 : vector<4x222xf32>
    %41 = vector.extract_strided_slice %20 {offsets = [0, 32], sizes = [4, 222], strides = [1, 1]} : vector<5x256xf32> to vector<4x222xf32>
    %cst_28 = arith.constant dense<0.000000e+00> : vector<4x222xf32>
    %42 = tpu.matmul %13, %41, %cst_28 {dimension_numbers = #tpu.dot_dimension_numbers<[1], [0], [0], [1], [0, 0, 1, 1], [], []>} : vector<4x4xf32>, vector<4x222xf32>, vector<4x222xf32> -> vector<4x222xf32>
    %43 = arith.addf %40, %42 : vector<4x222xf32>
    %44 = vector.extract_strided_slice %20 {offsets = [0, 33], sizes = [4, 222], strides = [1, 1]} : vector<5x256xf32> to vector<4x222xf32>
    %cst_29 = arith.constant dense<0.000000e+00> : vector<4x222xf32>
    %45 = tpu.matmul %15, %44, %cst_29 {dimension_numbers = #tpu.dot_dimension_numbers<[1], [0], [0], [1], [0, 0, 1, 1], [], []>} : vector<4x4xf32>, vector<4x222xf32>, vector<4x222xf32> -> vector<4x222xf32>
    %46 = arith.addf %43, %45 : vector<4x222xf32>
    %47 = vector.extract_strided_slice %20 {offsets = [0, 34], sizes = [4, 222], strides = [1, 1]} : vector<5x256xf32> to vector<4x222xf32>
    %cst_30 = arith.constant dense<0.000000e+00> : vector<4x222xf32>
    %48 = tpu.matmul %17, %47, %cst_30 {dimension_numbers = #tpu.dot_dimension_numbers<[1], [0], [0], [1], [0, 0, 1, 1], [], []>} : vector<4x4xf32>, vector<4x222xf32>, vector<4x222xf32> -> vector<4x222xf32>
    %49 = arith.addf %46, %48 : vector<4x222xf32>
    %c0_31 = arith.constant 0 : index
    %c0_32 = arith.constant 0 : index
    %c0_33 = arith.constant 0 : index
    %50 = vector.load %arg4[%c0_31, %c0_32, %c0_33] : memref<1x4x222xf32, #tpu.memory_space<vmem>>, vector<1x4x222xf32>
    %51 = vector.shape_cast %50 : vector<1x4x222xf32> to vector<4x222xf32>
    %52 = vector.shape_cast %49 : vector<4x222xf32> to vector<1x4x222xf32>
    tpu.vector_store %arg4[%c0_31, %c0_32, %c0_33], %52 {strides = array<i32>} : memref<1x4x222xf32, #tpu.memory_space<vmem>>, vector<1x4x222xf32>,
    return
  }
  func.func @transform_0(%arg0: i32) -> (i32, i32, i32) {
    %c0_i32 = arith.constant 0 : i32
    %c0_i32_0 = arith.constant 0 : i32
    %c0_i32_1 = arith.constant 0 : i32
    return %arg0, %c0_i32, %c0_i32_0 : i32, i32, i32
  }
  func.func @transform_1(%arg0: i32) -> (i32, i32, i32) {
    %c0_i32 = arith.constant 0 : i32
    %c0_i32_0 = arith.constant 0 : i32
    %c0_i32_1 = arith.constant 0 : i32
    %c0_i32_2 = arith.constant 0 : i32
    return %c0_i32, %c0_i32_0, %c0_i32_1 : i32, i32, i32
  }
  func.func @transform_2(%arg0: i32) -> (i32, i32) {
    %c0_i32 = arith.constant 0 : i32
    %c0_i32_0 = arith.constant 0 : i32
    %c0_i32_1 = arith.constant 0 : i32
    return %c0_i32, %c0_i32_0 : i32, i32
  }
  func.func @transform_3(%arg0: i32) -> (i32, i32, i32) {
    %c0_i32 = arith.constant 0 : i32
    %c0_i32_0 = arith.constant 0 : i32
    %c0_i32_1 = arith.constant 0 : i32
    return %arg0, %c0_i32, %c0_i32_0 : i32, i32, i32
  }
}

</mosaic_0001>

<bundles_post_ra>
// kernel: tpu_custom_call.1
= control target key start
LH: loop header
LB: loop body
LE: loop exit
PB: predicated region body
PF: predicated region fallthrough
CT: control target
= control target key end

     0   :  { %8 = vsyncpa [#allocation3], 0  ;;  %s1426_s0 = inlined_call_operand.vmem [shape: f32[2,5,256], index: 0, kind: input, shape index: {}]   ;;  %s1427_s1 = inlined_call_operand.vmem [shape: f32[9,4,4], index: 1, kind: input, shape index: {}]   ;;  %s1428_s2 = inlined_call_operand.vmem [shape: f32[4,1], index: 2, kind: input, shape index: {}]   ;;  %s1429_s3 = inlined_call_operand.hbm [shape: f32[2,4,222], index: 3, kind: output, shape index: {}]  }
   0x1   :  { %10 = vsyncpa [#allocation3 + $0x1], 0  ;;  %s1259_s12 = smov 0   ;;  %s1261_s13 = smov 0  }
   0x2   :  { %s1263_s14 = smov 0   ;;  %s1265_s15 = smov 0  }
   0x3 LB: > { %s1280_s16 = sadd.s32 4294967295, %s1226_s15   ;;  %s1047_s17 = sadd.s32 4294967294, %s1226_s15   ;;  %s1226_s15 = sphi %s1265_s15, %s1435_s15   ;;  %s1222_s14 = sphi %s1263_s14, %s1434_s14   ;;  %s1218_s13 = sphi %s1261_s13, %s1433_s13   ;;  %s1214_s12 = sphi %s1259_s12, %s1432_s12  }
   0x4   : > { %s1284_s18 = sadd.s32 1, %s1226_s15   ;;  %s91_s19 = sadd.s32 1, %s1222_s14 }
   0x5   : > { %s88_s20 = ssub.s32 %s1226_s15, %s1284_s18  ;;  %p101_p0 = scmp.ne.s32.totalorder %s1222_s14, %s1218_s13 }
   0x6   : > { %p89_p1 = scmp.eq.s32.totalorder %s88_s20, 0  ;;  %p102_p2 = scmp.eq.s32.totalorder %s1280_s16, 1 }
   0x7   : > { %p107_p3 = scmp.ne.s32.totalorder %s1218_s13, %s1214_s12  ;;  %p108_p4 = scmp.eq.s32.totalorder %s1047_s17, 1 }
   0x8   : > { %s1295_s21 = scalar_select %p89_p1, %s1222_s14, %s91_s19  }
   0x9   : > { %p1297_p5 = por %p102_p2, %p101_p0  ;;  %p1301_p6 = por %p108_p4, %p107_p3 }
   0xa   : > { %p1050_p7 = scmp.ge.s32.totalorder %s1226_s15, 1  ;;  %p140_p8 = scmp.lt.s32.totalorder %s1226_s15, 3 }
   0xc   : > { %p141_p9 = pnand %p1050_p7, %p140_p8 }
   0xd   : > { %p164_p10 = scmp.lt.s32.totalorder (!%p141_p9), %s1280_s16, 1  ;;  %v1228_v0 = vmov (!%p141_p9), 0.0   ;;  %vm198_vm0 = vcmask (!%p141_p9), 1043456   ;;  %s1229_s29 = smov (!%p141_p9), 110   ;;  %v169_v3 = vld [vmem:[%s1427_s1] sm:$0xf] (!%p141_p9) }
   0xe   : > { %144 = sbr.rel (%p141_p9) target bundleno = 410 (0x19a), region = 32  ;;  %269 = vmatprep.mubr.f32.mxu1 (!%p141_p9), %v1228_v0  ;;  %613 = vmatprep.mubr.f32.mxu0 (!%p141_p9), %v1228_v0  ;;  %s1230_s30 = smov (!%p141_p9), 111   ;;  %vm194_vm1 = vcmask (!%p141_p9), 31744   ;;  %v1236_v4 = vmov (!%p141_p9), 0   ;;  %v186_v5 = vld [vmem:[%s1428_s2] sm:$0xf] (!%p141_p9) }
   0xf   : > { %s1231_s6 = smov (!%p141_p9), 127   ;;  %s1232_s7 = smov (!%p141_p9), 96   ;;  %1163 = vset.pattern.permute.xlu0 (!%p141_p9), %v1236_v4  ;;  %vm626_vm2 = vcmask (!%p141_p9), 900096   ;;  %vm540_vm3 = vcmask (!%p141_p9), 908288   ;;  %v1057_v10 = vld [vmem:[%s1427_s1 + $0x10] sm:$0xf] (!%p141_p9) }
  0x10   : > { %s1233_s8 = smov (!%p141_p9), 126   ;;  %s1234_s9 = smov (!%p141_p9), 95   ;;  %vm282_vm4 = vcmask (!%p141_p9), 1039360   ;;  %v1054_v15 = vld [vmem:[%s1427_s1 + $0x4] sm:$0xf] (!%p141_p9)  ;;  %vm712_vm5 = vcmask (!%p141_p9), 785408  }
  0x11   : > { %s1235_s10 = smov (!%p141_p9), 112   ;;  %s1237_s11 = smov (!%p141_p9), 94   ;;  %v1058_v19 = vld [vmem:[%s1427_s1 + $0x14] sm:$0xf] (!%p141_p9)  ;;  %vm368_vm6 = vcmask (!%p141_p9), 1031168   ;;  %vm798_vm7 = vcmask (!%p141_p9), 777216  }
  0x12   : > { %v1055_v23 = vld [vmem:[%s1427_s1 + $0x8] sm:$0xf] (!%p141_p9)  ;;  %v1059_v27 = vld [vmem:[%s1427_s1 + $0x18] sm:$0xf] (!%p141_p9)  ;;  %vm454_vm8 = vcmask (!%p141_p9), 916480   ;;  %vm884_vm9 = vcmask (!%p141_p9), 769024  }
  0x13   : > { %v1056_v31 = vld [vmem:[%s1427_s1 + $0xc] sm:$0xf] (!%p141_p9)  ;;  %v1060_v35 = vld [vmem:[%s1427_s1 + $0x1c] sm:$0xf] (!%p141_p9)  ;;  %v1061_v37 = vld [vmem:[%s1427_s1 + $0x20] sm:$0xf] (!%p141_p9) }
  0x14   : > { %s161_s17 = sand.u32 (!%p141_p9), 1, %s1218_s13   ;;  %vm970_vm10 = vcmask (!%p141_p9), 769028   ;;  %s1095_s20 = sshll.u32 (!%p141_p9), %s1280_s16, 7 }
  0x15   : > { %s165_s24 = scalar_select %p164_p10, %s1280_s16, 1  ;;  %vm971_vm11 = vmor %vm970_vm10, %vm198_vm0 }
  0x16   : > { %s1051_s19 = sshll.u32 %s161_s17, 3  ;;  %s1238_s16 = smov [#allocation2]  }
  0x17   : > { %s1094_s25 = sshll.u32 %s165_s24, 4  ;;  %s163_s24 = scalar_lea.vmem [#allocation2], %s1051_s19 }
  0x18   : > { %s168_s28 = scalar_lea.vmem %s1426_s0, %s1094_s25  ;;  %s988_s25 = sshll.u32 %s163_s24, 4  ;;  %s1386_s25 = int_to_ptr.vmem [resolvable:$true] %s988_s25 }
  0x19   : > { %v187_v1 = vld [vmem:[%s168_s28] sm:$0x1f]  ;;  %v188_v2 = vld [vmem:[%s168_s28 + $0x8] sm:$0x1f]  ;;  %s1384_s28 = scalar_lea.hbm %s1429_s3, %s1095_s20  ;;  %s1168_s4 = sshll.u32 %s1238_s16, 4  ;;  %s1169_s4 = int_to_ptr.vmem [resolvable:$false] %s1168_s4 }
  0x1a   : > { %622 = vrot.lane.b32.xlu1 %v187_v1, %s1229_s29  ;;  %536 = vrot.lane.b32.xlu0 %v187_v1, %s1230_s30  ;;  %s1170_s5 = scalar_lea.vmem %s1169_s4, 256  ;;  %p1171_p0 = scmp.lt.s32.totalorder %s1386_s25, %s1169_s4 }
  0x1b   : > { %1062 = vmatprep.subr.msk.mxu1 %vm198_vm0, %v188_v2 }
  0x1c   : > { %1063 = vmatpush1.msk.msra.mxu1 %vm198_vm0, %v187_v1 }
  0x1d   : > { %1064 = vmatmul.mubr.msk.f32.vlgmr.msra.gmra.mrb[0].mxu1 %vm194_vm1, %v169_v3 }
  0x1e   : > { %624 = vrot.lane.b32.xlu1 %v188_v2, %s1229_s29  ;;  %538 = vrot.lane.b32.xlu0 %v188_v2, %s1230_s30  ;;  %s974_s29 = scalar_lea.sflag [#allocation3], %s161_s17  ;;  %s1164_s30 = scalar_lea.vmem %s1386_s25, 128 }
  0x1f   : > { %355 = vmatprep.mubr.f32.mxu1 %v1228_v0  ;;  %p1165_p11 = scmp.ne.s32.totalorder %s1386_s25, %s1164_s30  ;;  %p1172_p1 = scmp.lt.s32.totalorder %s1170_s5, %s1164_s30 }
  0x21   : > { %p1166_p12 = pnand %p1165_p11, %p1297_p5  ;;  %p1173_p2 = por %p1172_p1, %p1171_p0 }
  0x22   : > { %280 = vrot.lane.b32.xlu1 %v188_v2, %s1231_s6  ;;  %278 = vrot.lane.b32.xlu0 %v187_v1, %s1231_s6 }
  0x23   : > { %p1167_p13 = pneg %p1166_p12 }
  0x25   : > { %p1174_p3 = pnand %p1173_p2, %p1167_p13 }
  0x26   : > { %710 = vrot.lane.b32.xlu1 %v188_v2, %s1232_s7  ;;  %708 = vrot.lane.b32.xlu0 %v187_v1, %s1232_s7 }
  0x2a   : > { %366 = vrot.lane.b32.xlu1 %v188_v2, %s1233_s8  ;;  %364 = vrot.lane.b32.xlu0 %v187_v1, %s1233_s8 }
  0x2e   : > { %796 = vrot.lane.b32.xlu1 %v188_v2, %s1234_s9  ;;  %794 = vrot.lane.b32.xlu0 %v187_v1, %s1234_s9 }
  0x32   : > { %452 = vrot.lane.b32.xlu1 %v188_v2, %s1235_s10  ;;  %450 = vrot.lane.b32.xlu0 %v187_v1, %s1235_s10 }
  0x36   : > { %882 = vrot.lane.b32.xlu1 %v188_v2, %s1237_s11  ;;  %880 = vrot.lane.b32.xlu0 %v187_v1, %s1237_s11 }
  0x3a   : > { %191 = vperm.xlu0 %1163, %v186_v5  }
  0x8c   : > { %v623_v6 = vpop.permute.xlu1 %622  ;;  %v537_v7 = vpop.permute.xlu0 %536 }
  0x90   : > { %v625_v8 = vpop.permute.xlu1 %624  ;;  %v539_v9 = vpop.permute.xlu0 %538 }
  0x91   : > { %v627_v11 = vsel %vm626_vm2, %v623_v6, %v625_v8  ;;  %1074 = vmatprep.subr.msk.mxu0 %vm198_vm0, %v539_v9  ;;  %v541_v12 = vsel %vm540_vm3, %v537_v7, %v539_v9 }
  0x92   : > { %1075 = vmatpush1.msk.msra.mxu0 %vm198_vm0, %v541_v12 }
  0x93   : > { %1076 = vmatmul.mubr.msk.f32.vlgmr.msra.gmra.mrb[0].mxu0 %vm194_vm1, %v1057_v10  ;;  %1077 = vmatprep.subr.msk.mxu0 %vm198_vm0, %v625_v8 }
  0x94   : > { %v281_v13 = vpop.permute.xlu1 %280  ;;  %1078 = vmatpush1.msk.msra.mxu0 %vm198_vm0, %v627_v11  ;;  %v279_v14 = vpop.permute.xlu0 %278  ;;  %699 = vmatprep.mubr.f32.mxu0 %v1228_v0 }
  0x95   : > { %v283_v16 = vsel %vm282_vm4, %v279_v14, %v281_v13  ;;  %1065 = vmatprep.subr.msk.mxu1 %vm198_vm0, %v281_v13 }
  0x96   : > { %1066 = vmatpush1.msk.msra.mxu1 %vm198_vm0, %v283_v16 }
  0x97   : > { %1067 = vmatmul.mubr.msk.f32.vlgmr.msra.gmra.mrb[0].mxu1 %vm194_vm1, %v1054_v15 }
  0x98   : > { %v711_v17 = vpop.permute.xlu1 %710  ;;  %v709_v18 = vpop.permute.xlu0 %708  ;;  %441 = vmatprep.mubr.f32.mxu1 %v1228_v0 }
  0x99   : > { %v713_v20 = vsel %vm712_vm5, %v709_v18, %v711_v17  ;;  %1080 = vmatprep.subr.msk.mxu0 %vm198_vm0, %v711_v17 }
  0x9b   : > { %1079 = vmatmul.mubr.msk.f32.vlgmr.msra.gmra.mrb[0].mxu0 %vm194_vm1, %v1058_v19 }
  0x9c   : > { %v367_v21 = vpop.permute.xlu1 %366  ;;  %1081 = vmatpush1.msk.msra.mxu0 %vm198_vm0, %v713_v20  ;;  %v365_v22 = vpop.permute.xlu0 %364  ;;  %785 = vmatprep.mubr.f32.mxu0 %v1228_v0 }
  0x9d   : > { %v369_v24 = vsel %vm368_vm6, %v365_v22, %v367_v21  ;;  %1068 = vmatprep.subr.msk.mxu1 %vm198_vm0, %v367_v21 }
  0x9e   : > { %1069 = vmatpush1.msk.msra.mxu1 %vm198_vm0, %v369_v24 }
  0x9f   : > { %1070 = vmatmul.mubr.msk.f32.vlgmr.msra.gmra.mrb[0].mxu1 %vm194_vm1, %v1055_v23 }
  0xa0   : > { %v797_v25 = vpop.permute.xlu1 %796  ;;  %v795_v26 = vpop.permute.xlu0 %794  ;;  %527 = vmatprep.mubr.f32.mxu1 %v1228_v0 }
  0xa1   : > { %v799_v28 = vsel %vm798_vm7, %v795_v26, %v797_v25  ;;  %1083 = vmatprep.subr.msk.mxu0 %vm198_vm0, %v797_v25 }
  0xa3   : > { %1082 = vmatmul.mubr.msk.f32.vlgmr.msra.gmra.mrb[0].mxu0 %vm194_vm1, %v1059_v27 }
  0xa4   : > { %v453_v29 = vpop.permute.xlu1 %452  ;;  %1084 = vmatpush1.msk.msra.mxu0 %vm198_vm0, %v799_v28  ;;  %v451_v30 = vpop.permute.xlu0 %450  ;;  %871 = vmatprep.mubr.f32.mxu0 %v1228_v0 }
  0xa5   : > { %v455_v32 = vsel %vm454_vm8, %v451_v30, %v453_v29  ;;  %1071 = vmatprep.subr.msk.mxu1 %vm198_vm0, %v453_v29 }
  0xa6   : > { %1072 = vmatpush1.msk.msra.mxu1 %vm198_vm0, %v455_v32 }
  0xa7   : > { %1073 = vmatmul.mubr.msk.f32.vlgmr.msra.gmra.mrb[0].mxu1 %vm194_vm1, %v1056_v31 }
  0xa8   : > { %v883_v33 = vpop.permute.xlu1 %882  ;;  %v881_v34 = vpop.permute.xlu0 %880 }
  0xa9   : > { %v885_v36 = vsel %vm884_vm9, %v881_v34, %v883_v33  ;;  %1086 = vmatprep.subr.msk.mxu0 %vm198_vm0, %v883_v33 }
  0xab   : > { %1085 = vmatmul.mubr.msk.f32.vlgmr.msra.gmra.mrb[0].mxu0 %vm194_vm1, %v1060_v35 }
  0xac   : > { %1087 = vmatpush1.msk.msra.mxu0 %vm198_vm0, %v885_v36  ;;  %957 = vmatprep.mubr.f32.mxu0 %v1228_v0 }
  0xb3   : > { %1088 = vmatmul.mubr.msk.f32.vlgmr.msra.gmra.mrb[0].mxu0 %vm194_vm1, %v1061_v37 }
  0xb9   : > { %v192_v40 = vpop.permute.xlu0 %191 }
 0x17a   : > { %v529_v38 = vpop.f32.mrb[0].mxu1 }
 0x17b   : > { %v531_v39 = vpop.f32.mrb[1].mxu1  ;;  %v1096_v41 = vadd.f32 %v529_v38, %v192_v40 }
 0x17c   : > { %v1098_v42 = vadd.f32 %v531_v39, %v192_v40 }
 0x186   : > { %v959_v43 = vpop.f32.mrb[0].mxu0 }
 0x187   : > { %v1097_v44 = vadd.f32 %v1096_v41, %v959_v43  ;;  %v961_v45 = vpop.f32.mrb[1].mxu0 }
 0x188   : > { %v1099_v46 = vadd.f32 %v1098_v42, %v961_v45 }
 0x18a   : > { %v968_v47 = vcombine.low %v1097_v44, %v1099_v46 }
 0x18c   : > { %972 = vst.msk [vmem:[%s163_s24] sm:$0xff] %vm971_vm11, %v968_v47 }
 0x18d   : > { %1177 = shalt.err (!%p1174_p3)
}
 0x18e   : > { %s1178_s6 = scalar_lea.hbm %s1384_s28, 128  ;;  %s1182_s9 = scalar_lea.hbm %s1429_s3, 256 }
 0x18f   : > { %p1179_p4 = scmp.ne.s32.totalorder %s1384_s28, %s1178_s6  ;;  %p1183_p9 = scmp.lt.u32.totalorder %s1384_s28, %s1429_s3 }
 0x190   : > { %p1184_p10 = scmp.lt.u32.totalorder %s1182_s9, %s1178_s6  ;;  %p1186_p12 = scmp.lt.u32.totalorder %s1178_s6, %s1384_s28 }
 0x191   : > { %p1180_p7 = pnand %p1179_p4, %p1297_p5 }
 0x192   : > { %p1185_p11 = por %p1184_p10, %p1183_p9 }
 0x193   : > { %p1181_p8 = pneg %p1180_p7 }
 0x194   : > { %p1187_p13 = por %p1186_p12, %p1185_p11 }
 0x196   : > { %p1188_p0 = pnand %p1187_p13, %p1181_p8 }
 0x198   : > { %1191 = shalt.err (!%p1188_p0)
}
 0x199   : > { %1114 = dma.vmem_to_hbm [thread:$0]  (%p1297_p5), %s1386_s25, 128, %s1384_s28, %s974_s29  }
 0x19a PF: > { %p1120_p1 = scmp.ge.s32.totalorder %s1226_s15, 2  ;;  %s1000_s17 = sand.u32 1, %s1214_s12  }
 0x19b   : > { %s1001_s19 = scalar_lea.sflag [#allocation3], %s1000_s17 }
 0x19c   : > { %p1117_p2 = pnand %p1120_p1, %p1301_p6 }
 0x19e   : > { %1209 = dma.done.wait (!%p1117_p2), %s1001_s19, 128  }
 0x19f   : > { %1211 = vsyncadd (!%p1117_p2), %s1001_s19, 4294967168  ;;  %p13_p3 = scmp.ge.s32.totalorder %s1284_s18, 4   ;;  %s1432_s12 = smov %s1218_s13 }
 0x1a0   : > { %s1433_s13 = smov %s1222_s14  ;;  %s1434_s14 = smov %s1295_s21 }
 0x1a1   : > { %s1435_s15 = smov %s1284_s18  ;;  %15 = sbr.rel (!%p13_p3) target bundleno = 3 (0x3), region = 75 }
 0x1a8   :  { %1006 = vsyncpa [#allocation3], 1 }
 0x1a9   :  { %1008 = vsyncpa [#allocation3 + $0x1], 1 }

</bundles_post_ra>
